<compile_context>
chip_gen: v6e
topology: v6e:2x2x1
jax: 0.10.0
libtpu: 0.0.40
codegen_flags: <defaults>
</compile_context>

<pallas_src>
import functools

import jax
import jax.numpy as jnp
import numpy as np
from jax.experimental import pallas as pl
from jax.experimental.pallas import tpu as pltpu

BN_EPS = 1e-5


def _round_up(x, m):
    return ((x + m - 1) // m) * m


def _query_vmem_bytes():
    # Trace-time hardware query, done once outside any jit.  Falls back to a
    # v7x-sized (conservative) value if the query is unavailable.
    try:
        return int(pltpu.get_tpu_info().vmem_capacity_bytes)
    except Exception:
        return 64 * 2**20


_VMEM_BYTES = _query_vmem_bytes()


# ----------------------------------------------------------------------------
# Pallas kernel: in-VMEM 2x2 im2col (shifted slices) + 4-branch conv matmuls
# + BN bias/ReLU6 + block-diag 1x1 matmul + sigmoid + 4-way softmax.
# ----------------------------------------------------------------------------
def _index_block_kernel(xm_ref, xh_ref, w1s_ref, bias_ref, w2_ref, asum_ref,
                        yT_ref, zT_ref, buf_ref, *, shifts, tm):
    # Assemble the contiguous lane window [main tile | halo] in VMEM so the
    # four conv taps are plain statically-shifted slices of one buffer.
    buf_ref[:, :tm] = xm_ref[...]
    buf_ref[:, tm:] = xh_ref[...]

    # 2x2 stride-1 conv over 4C phase channels == original 4x4/stride-2 conv;
    # all 4 index branches stacked on the output rows.  BN scale is already
    # folded into w1s; accumulate in f32 on the MXU.
    h = None
    for s_idx, s in enumerate(shifts):
        part = jnp.dot(w1s_ref[s_idx], buf_ref[:, s:s + tm],
                       preferred_element_type=jnp.float32)
        h = part if h is None else h + part

    # Folded BatchNorm bias + ReLU6 (f32 on the VPU).
    h = jnp.clip(h + bias_ref[...], 0.0, 6.0)

    # Branch 1x1 convs as one block-diagonal bf16 matmul: (4C,4C) @ (4C,TM).
    logits = jnp.dot(w2_ref[...], h.astype(jnp.bfloat16),
                     preferred_element_type=jnp.float32)

    # Sigmoid: exp + approximate reciprocal both run on the EUP (no VALU div).
    y = pl.reciprocal(1.0 + jnp.exp(-logits), approx=True)
    yT_ref[...] = y.astype(yT_ref.dtype)   # store early -> shorter live range

    # Softmax over the 4 branches (rows = k*C + ch).  y in (0,1) so exp(y) in
    # (1,e): no max-subtraction needed.  The per-channel branch sum is
    # broadcast back to all 4C rows with a constant 0/1 indicator matmul
    # (asum[i,j] = 1 iff i%C == j%C) -> no sublane slicing / concatenation.
    e = jnp.exp(y)
    den = jnp.dot(asum_ref[...], e.astype(jnp.bfloat16),
                  preferred_element_type=jnp.float32)
    zT_ref[...] = (e * pl.reciprocal(den, approx=True)).astype(zT_ref.dtype)


# ----------------------------------------------------------------------------
# Generation-aware lane-tile selection.
# ----------------------------------------------------------------------------
def _choose_m_tile(m, c4, th, vmem_bytes, tm_req=None):
    two_tc = vmem_bytes <= 64 * 2**20          # v7x: 64MiB VMEM, 2 TensorCores
    budget = (40 if two_tc else 96) * 2**20    # v5e/v6e: 128MiB, 1 TensorCore

    def footprint(t):
        return (2 * c4 * t * 2            # main input blocks (x2 bufs, bf16)
                + 2 * 2 * c4 * t * 2      # two bf16 outputs (x2 bufs)
                + 2 * c4 * th * 2         # halo blocks
                + c4 * (t + th) * 2       # concat scratch
                + 4 * c4 * t * 4          # f32 live temporaries (h/logits/y/e)
                + 6 * c4 * c4 * 2 + c4 * 4)

    if tm_req is not None:
        tm = max(th, (int(tm_req) // th) * th)
        return tm, _round_up(m, tm), footprint(tm)

    m_cap = _round_up(m, th)
    tm = th
    while tm < 8192 and tm * 2 <= m_cap and footprint(tm * 2) <= budget:
        tm *= 2
    if two_tc:
        # Prefer an even grid-step count so the single "parallel" axis splits
        # evenly across both v7x TensorCores (skip on 1-TC v5e/v6e).
        steps = _round_up(m, tm) // tm
        if steps % 2 == 1 and tm > th:
            cand = tm // 2
            if cand % th == 0 and (_round_up(m, cand) // cand) % 2 == 0:
                tm = cand
    return tm, _round_up(m, tm), footprint(tm)


# ----------------------------------------------------------------------------
# Wrapper (space-to-depth + pallas_call + pixel-shuffle layout glue), jitted.
# ----------------------------------------------------------------------------
@functools.partial(jax.jit, static_argnames=("tm",))
def depthwise_m2o_index_block(x, w1, gamma, beta, run_mean, run_var, w2,
                              *, tm=None):
    """x: (B, C, H, W) float32.  Returns (idx_en, idx_de), each (B, C, H, W)."""
    bs, c, h, w = x.shape
    oh, ow = h // 2, w // 2
    ohp, owp = oh + 1, ow + 1          # half-res grid incl. the conv padding
    c4 = 4 * c
    m_eff = bs * ohp * owp             # lane axis: flattened (b, r, col)

    # --- space-to-depth of the padded input (bf16, ~1x the size of x). ---
    # xp[b,ci,2r+ph,2col+pw] -> xsd[(2*ph+pw)*C + ci, b*ohp*owp + r*owp + col]
    xp = jnp.pad(x.astype(jnp.bfloat16), ((0, 0), (0, 0), (1, 1), (1, 1)))
    xsd = xp.reshape(bs, c, ohp, 2, owp, 2)
    xsd = xsd.transpose(3, 5, 1, 0, 2, 4).reshape(c4, m_eff)

    # Halo width: the largest in-kernel tap shift is owp + 1 lanes.
    th = _round_up(owp + 2, 128)
    tm_eff, m_pad, fp = _choose_m_tile(m_eff, c4, th, _VMEM_BYTES, tm)
    m_tot = m_pad + th                 # extra th columns back the halo blocks
    xsd = jnp.pad(xsd, ((0, 0), (0, m_tot - m_eff)))

    # --- parameter packing (glue). ---
    # 4x4 taps (kh,kw) split as kh=2*dh+ph, kw=2*dw+pw:
    #   w1s[2*dh+dw][k*C+oc, (2*ph+pw)*C+ci] = bn_scale[k,oc]*w1[k,oc,ci,kh,kw]
    inv_std = 1.0 / jnp.sqrt(run_var + BN_EPS)                        # (4, C)
    scale = (gamma * inv_std).reshape(c4)
    bias = (beta - run_mean * gamma * inv_std).reshape(c4, 1).astype(jnp.float32)
    w1r = w1.reshape(4, c, c, 2, 2, 2, 2)          # (k, oc, ci, dh, ph, dw, pw)
    w1s = w1r.transpose(3, 5, 0, 1, 4, 6, 2).reshape(4, c4, c4)
    w1s = (w1s * scale[None, :, None]).astype(jnp.bfloat16)
    # w2: (4, Cout, Cin) -> block-diagonal (4C, 4C) acting on the left of h.
    w2bd = jax.scipy.linalg.block_diag(*[w2[k] for k in range(4)])
    w2bd = w2bd.astype(jnp.bfloat16)
    # Branch-sum broadcast matrix for the softmax denominator (0/1 -> exact).
    ridx = np.arange(c4)
    asum = jnp.asarray((ridx[:, None] % c == ridx[None, :] % c)
                       .astype(np.float32)).astype(jnp.bfloat16)

    shifts = tuple(dh * owp + dw for dh in (0, 1) for dw in (0, 1))
    ratio = tm_eff // th
    grid = (m_pad // tm_eff,)

    cost = pl.CostEstimate(
        flops=int(2 * m_pad * c4 * c4 * 6 + 12 * m_pad * c4),
        transcendentals=int(4 * m_pad * c4),
        bytes_accessed=int(m_tot * c4 * 2 + grid[0] * th * c4 * 2
                           + 2 * m_pad * c4 * 2 + 6 * c4 * c4 * 2 + c4 * 4),
    )

    kernel = functools.partial(_index_block_kernel, shifts=shifts, tm=tm_eff)

    yT, zT = pl.pallas_call(
        kernel,
        out_shape=(jax.ShapeDtypeStruct((c4, m_pad), jnp.bfloat16),
                   jax.ShapeDtypeStruct((c4, m_pad), jnp.bfloat16)),
        grid_spec=pltpu.PrefetchScalarGridSpec(
            num_scalar_prefetch=0,
            grid=grid,
            in_specs=[
                # If a profile shows exposed DMA on this stream, add
                # pipeline_mode=pl.Buffered(3).
                pl.BlockSpec((c4, tm_eff), lambda i: (0, i)),            # xsd tile
                pl.BlockSpec((c4, th), lambda i: (0, (i + 1) * ratio)),  # xsd halo
                pl.BlockSpec((4, c4, c4), lambda i: (0, 0, 0)),          # conv taps
                pl.BlockSpec((c4, 1), lambda i: (0, 0)),                 # bn bias
                pl.BlockSpec((c4, c4), lambda i: (0, 0)),                # w2 blkdiag
                pl.BlockSpec((c4, c4), lambda i: (0, 0)),                # branch-sum
            ],
            out_specs=[
                pl.BlockSpec((c4, tm_eff), lambda i: (0, i)),
                pl.BlockSpec((c4, tm_eff), lambda i: (0, i)),
            ],
            scratch_shapes=[pltpu.VMEM((c4, tm_eff + th), jnp.bfloat16)],
        ),
        compiler_params=pltpu.CompilerParams(
            dimension_semantics=("parallel",),
            vmem_limit_bytes=int(min(int(0.7 * _VMEM_BYTES),
                                     max(16 * 2**20, int(1.5 * fp) + (2 << 20)))),
        ),
        cost_estimate=cost,
    )(xsd, xsd, w1s, bias, w2bd, asum)

    # --- drop padding/phantom columns + pixel_shuffle(2) (XLA layout glue). ---
    # TODO(synk): write the pixel-shuffled NCHW layout directly from the kernel
    # (strided lane stores) to remove these transposes entirely; bf16 outputs
    # already halve their traffic.
    def to_nchw(t):            # t: (4C, m_pad), row = k*C + ch, k = 2*dr + dc
        t = t[:, :m_eff].reshape(2, 2, c, bs, ohp, owp)[..., :oh, :ow]
        t = t.transpose(3, 2, 4, 0, 5, 1).reshape(bs, c, h, w)
        return t.astype(jnp.float32)

    idx_en = to_nchw(zT)   # pixel_shuffle(softmax)
    idx_de = to_nchw(yT)   # pixel_shuffle(sigmoid)
    return idx_en, idx_de


# ----------------------------------------------------------------------------
# Pure-JAX f32 reference (mirrors the PyTorch forward) for verification.
# ----------------------------------------------------------------------------
def _reference(x, w1, gamma, beta, run_mean, run_var, w2):
    outs = []
    for k in range(4):
        hk = jax.lax.conv_general_dilated(
            x, w1[k], window_strides=(2, 2), padding=((1, 1), (1, 1)),
            dimension_numbers=('NCHW', 'OIHW', 'NCHW'))
        sc = (gamma[k] / jnp.sqrt(run_var[k] + BN_EPS))[None, :, None, None]
        bi = (beta[k] - run_mean[k] * gamma[k] /
              jnp.sqrt(run_var[k] + BN_EPS))[None, :, None, None]
        hk = jnp.clip(hk * sc + bi, 0.0, 6.0)
        o = jax.lax.conv_general_dilated(
            hk, w2[k][:, :, None, None], window_strides=(1, 1), padding='VALID',
            dimension_numbers=('NCHW', 'OIHW', 'NCHW'))
        outs.append(o)
    xc = jnp.stack(outs, axis=2)                      # (B, C, 4, OH, OW)
    y = jax.nn.sigmoid(xc)
    z = jax.nn.softmax(y, axis=2)

    def pixel_shuffle(t):
        bs, c, _, oh, ow = t.shape
        t = t.reshape(bs, c, 2, 2, oh, ow)
        t = t.transpose(0, 1, 4, 2, 5, 3).reshape(bs, c, 2 * oh, 2 * ow)
        return t

    return pixel_shuffle(z), pixel_shuffle(y)


if __name__ == "__main__":
    key = jax.random.PRNGKey(0)
    k_x, k_w1, k_w2, k_g, k_b, k_m, k_v = jax.random.split(key, 7)

    bs, c, h, w = 2, 4, 16, 16
    x = jax.random.normal(k_x, (bs, c, h, w), jnp.float32)

    # Deterministic synthetic parameters (module __init__ shapes).
    w1 = jax.random.normal(k_w1, (4, c, c, 4, 4), jnp.float32) * 0.1   # 4x Conv2d(c,c,4,4)
    w2 = jax.random.normal(k_w2, (4, c, c), jnp.float32) * 0.1          # 4x Conv2d(c,c,1,1)
    gamma = 1.0 + 0.1 * jax.random.normal(k_g, (4, c), jnp.float32)     # 4x BatchNorm2d(c)
    beta = 0.1 * jax.random.normal(k_b, (4, c), jnp.float32)
    run_mean = 0.1 * jax.random.normal(k_m, (4, c), jnp.float32)
    run_var = 1.0 + 0.1 * jax.random.uniform(k_v, (4, c), jnp.float32)
    # TODO(synk): PyTorch BatchNorm2d in training mode uses batch statistics;
    # here BN is applied in eval mode with fixed running stats.

    idx_en, idx_de = depthwise_m2o_index_block(
        x, w1, gamma, beta, run_mean, run_var, w2)
    jax.block_until_ready((idx_en, idx_de))

    ref_en, ref_de = _reference(x, w1, gamma, beta, run_mean, run_var, w2)
    # bf16 inputs/weights/outputs + approx reciprocals -> compare at 2e-2.
    np.testing.assert_allclose(np.asarray(idx_en), np.asarray(ref_en),
                               atol=2e-2, rtol=2e-2)
    np.testing.assert_allclose(np.asarray(idx_de), np.asarray(ref_de),
                               atol=2e-2, rtol=2e-2)
    assert idx_en.shape == (bs, c, h, w) and idx_de.shape == (bs, c, h, w)

    print("KERNEL_OK")
</pallas_src>

<mosaic_0001>
module attributes {stable_mosaic.version = 11 : i64} {
  func.func @_index_block_kernel(%arg0: i32, %arg1: memref<16x128xbf16, #tpu.memory_space<vmem>>, %arg2: memref<16x128xbf16, #tpu.memory_space<vmem>>, %arg3: memref<4x16x16xbf16, #tpu.memory_space<vmem>>, %arg4: memref<16x1xf32, #tpu.memory_space<vmem>>, %arg5: memref<16x16xbf16, #tpu.memory_space<vmem>>, %arg6: memref<16x16xbf16, #tpu.memory_space<vmem>>, %arg7: memref<16x128xbf16, #tpu.memory_space<vmem>>, %arg8: memref<16x128xbf16, #tpu.memory_space<vmem>>, %arg9: memref<16x256xbf16, #tpu.memory_space<vmem>>) attributes {dimension_semantics = [#tpu.dimension_semantics<parallel>], iteration_bounds = array<i64: 2>, scalar_prefetch = 0 : i64, scratch_operands = 1 : i64, tpu.core_type = #tpu.core_type<tc>, window_params = [{transform_indices = @transform_0, window_bounds = array<i64: 16, 128>}, {transform_indices = @transform_1, window_bounds = array<i64: 16, 128>}, {pipeline_mode = #tpu.pipeline_mode<synchronous>, transform_indices = @transform_2, window_bounds = array<i64: 4, 16, 16>}, {pipeline_mode = #tpu.pipeline_mode<synchronous>, transform_indices = @transform_3, window_bounds = array<i64: 16, 1>}, {pipeline_mode = #tpu.pipeline_mode<synchronous>, transform_indices = @transform_4, window_bounds = array<i64: 16, 16>}, {pipeline_mode = #tpu.pipeline_mode<synchronous>, transform_indices = @transform_5, window_bounds = array<i64: 16, 16>}, {transform_indices = @transform_6, window_bounds = array<i64: 16, 128>}, {transform_indices = @transform_7, window_bounds = array<i64: 16, 128>}]} {
    %c0 = arith.constant 0 : index
    %c0_0 = arith.constant 0 : index
    %0 = vector.load %arg1[%c0, %c0_0] : memref<16x128xbf16, #tpu.memory_space<vmem>>, vector<16x128xbf16>
    %c0_1 = arith.constant 0 : index
    %c0_2 = arith.constant 0 : index
    %1 = vector.load %arg9[%c0_1, %c0_2] : memref<16x256xbf16, #tpu.memory_space<vmem>>, vector<16x128xbf16>
    tpu.vector_store %arg9[%c0_1, %c0_2], %0 {strides = array<i32>} : memref<16x256xbf16, #tpu.memory_space<vmem>>, vector<16x128xbf16>,
    %c0_3 = arith.constant 0 : index
    %c0_4 = arith.constant 0 : index
    %2 = vector.load %arg2[%c0_3, %c0_4] : memref<16x128xbf16, #tpu.memory_space<vmem>>, vector<16x128xbf16>
    %c0_5 = arith.constant 0 : index
    %c128 = arith.constant 128 : index
    %3 = vector.load %arg9[%c0_5, %c128] : memref<16x256xbf16, #tpu.memory_space<vmem>>, vector<16x128xbf16>
    tpu.vector_store %arg9[%c0_5, %c128], %2 {strides = array<i32>} : memref<16x256xbf16, #tpu.memory_space<vmem>>, vector<16x128xbf16>,
    %c0_6 = arith.constant 0 : index
    %c0_7 = arith.constant 0 : index
    %c0_8 = arith.constant 0 : index
    %4 = vector.load %arg3[%c0_6, %c0_7, %c0_8] : memref<4x16x16xbf16, #tpu.memory_space<vmem>>, vector<1x16x16xbf16>
    %5 = vector.shape_cast %4 : vector<1x16x16xbf16> to vector<16x16xbf16>
    %c0_9 = arith.constant 0 : index
    %c0_10 = arith.constant 0 : index
    %6 = vector.load %arg9[%c0_9, %c0_10] : memref<16x256xbf16, #tpu.memory_space<vmem>>, vector<16x128xbf16>
    %cst = arith.constant dense<0.000000e+00> : vector<16x128xf32>
    %7 = tpu.matmul %5, %6, %cst {dimension_numbers = #tpu.dot_dimension_numbers<[1], [0], [0], [1], [0, 0, 1, 1], [], []>} : vector<16x16xbf16>, vector<16x128xbf16>, vector<16x128xf32> -> vector<16x128xf32>
    %c1 = arith.constant 1 : index
    %c0_11 = arith.constant 0 : index
    %c0_12 = arith.constant 0 : index
    %8 = vector.load %arg3[%c1, %c0_11, %c0_12] : memref<4x16x16xbf16, #tpu.memory_space<vmem>>, vector<1x16x16xbf16>
    %9 = vector.shape_cast %8 : vector<1x16x16xbf16> to vector<16x16xbf16>
    %c0_13 = arith.constant 0 : index
    %c1_14 = arith.constant 1 : index
    %10 = vector.load %arg9[%c0_13, %c1_14] : memref<16x256xbf16, #tpu.memory_space<vmem>>, vector<16x128xbf16>
    %cst_15 = arith.constant dense<0.000000e+00> : vector<16x128xf32>
    %11 = tpu.matmul %9, %10, %cst_15 {dimension_numbers = #tpu.dot_dimension_numbers<[1], [0], [0], [1], [0, 0, 1, 1], [], []>} : vector<16x16xbf16>, vector<16x128xbf16>, vector<16x128xf32> -> vector<16x128xf32>
    %12 = arith.addf %7, %11 : vector<16x128xf32>
    %c2 = arith.constant 2 : index
    %c0_16 = arith.constant 0 : index
    %c0_17 = arith.constant 0 : index
    %13 = vector.load %arg3[%c2, %c0_16, %c0_17] : memref<4x16x16xbf16, #tpu.memory_space<vmem>>, vector<1x16x16xbf16>
    %14 = vector.shape_cast %13 : vector<1x16x16xbf16> to vector<16x16xbf16>
    %c0_18 = arith.constant 0 : index
    %c9 = arith.constant 9 : index
    %15 = vector.load %arg9[%c0_18, %c9] : memref<16x256xbf16, #tpu.memory_space<vmem>>, vector<16x128xbf16>
    %cst_19 = arith.constant dense<0.000000e+00> : vector<16x128xf32>
    %16 = tpu.matmul %14, %15, %cst_19 {dimension_numbers = #tpu.dot_dimension_numbers<[1], [0], [0], [1], [0, 0, 1, 1], [], []>} : vector<16x16xbf16>, vector<16x128xbf16>, vector<16x128xf32> -> vector<16x128xf32>
    %17 = arith.addf %12, %16 : vector<16x128xf32>
    %c3 = arith.constant 3 : index
    %c0_20 = arith.constant 0 : index
    %c0_21 = arith.constant 0 : index
    %18 = vector.load %arg3[%c3, %c0_20, %c0_21] : memref<4x16x16xbf16, #tpu.memory_space<vmem>>, vector<1x16x16xbf16>
    %19 = vector.shape_cast %18 : vector<1x16x16xbf16> to vector<16x16xbf16>
    %c0_22 = arith.constant 0 : index
    %c10 = arith.constant 10 : index
    %20 = vector.load %arg9[%c0_22, %c10] : memref<16x256xbf16, #tpu.memory_space<vmem>>, vector<16x128xbf16>
    %cst_23 = arith.constant dense<0.000000e+00> : vector<16x128xf32>
    %21 = tpu.matmul %19, %20, %cst_23 {dimension_numbers = #tpu.dot_dimension_numbers<[1], [0], [0], [1], [0, 0, 1, 1], [], []>} : vector<16x16xbf16>, vector<16x128xbf16>, vector<16x128xf32> -> vector<16x128xf32>
    %22 = arith.addf %17, %21 : vector<16x128xf32>
    %c0_24 = arith.constant 0 : index
    %c0_25 = arith.constant 0 : index
    %23 = vector.load %arg4[%c0_24, %c0_25] : memref<16x1xf32, #tpu.memory_space<vmem>>, vector<16x1xf32>
    %24 = vector.broadcast %23 : vector<16x1xf32> to vector<16x128xf32>
    %25 = arith.addf %22, %24 : vector<16x128xf32>
    %cst_26 = arith.constant 0.000000e+00 : f32
    %cst_27 = arith.constant 6.000000e+00 : f32
    %26 = vector.broadcast %cst_26 : f32 to vector<16x128xf32>
    %27 = arith.maximumf %26, %25 : vector<16x128xf32>
    %28 = vector.broadcast %cst_27 : f32 to vector<16x128xf32>
    %29 = arith.minimumf %28, %27 : vector<16x128xf32>
    %c0_28 = arith.constant 0 : index
    %c0_29 = arith.constant 0 : index
    %30 = vector.load %arg5[%c0_28, %c0_29] : memref<16x16xbf16, #tpu.memory_space<vmem>>, vector<16x16xbf16>
    %31 = arith.truncf %29 : vector<16x128xf32> to vector<16x128xbf16>
    %cst_30 = arith.constant dense<0.000000e+00> : vector<16x128xf32>
    %32 = tpu.matmul %30, %31, %cst_30 {dimension_numbers = #tpu.dot_dimension_numbers<[1], [0], [0], [1], [0, 0, 1, 1], [], []>} : vector<16x16xbf16>, vector<16x128xbf16>, vector<16x128xf32> -> vector<16x128xf32>
    %cst_31 = arith.constant 0.000000e+00 : f32
    %33 = vector.broadcast %cst_31 : f32 to vector<16x128xf32>
    %34 = arith.subf %33, %32 : vector<16x128xf32>
    %35 = math.exp %34 : vector<16x128xf32>
    %cst_32 = arith.constant 1.000000e+00 : f32
    %36 = vector.broadcast %cst_32 : f32 to vector<16x128xf32>
    %37 = arith.addf %36, %35 : vector<16x128xf32>
    %38 = tpu.reciprocal %37 {approx = true} : vector<16x128xf32> -> vector<16x128xf32>
    %39 = arith.truncf %38 : vector<16x128xf32> to vector<16x128xbf16>
    %c0_33 = arith.constant 0 : index
    %c0_34 = arith.constant 0 : index
    %40 = vector.load %arg7[%c0_33, %c0_34] : memref<16x128xbf16, #tpu.memory_space<vmem>>, vector<16x128xbf16>
    tpu.vector_store %arg7[%c0_33, %c0_34], %39 {strides = array<i32>} : memref<16x128xbf16, #tpu.memory_space<vmem>>, vector<16x128xbf16>,
    %41 = math.exp %38 : vector<16x128xf32>
    %c0_35 = arith.constant 0 : index
    %c0_36 = arith.constant 0 : index
    %42 = vector.load %arg6[%c0_35, %c0_36] : memref<16x16xbf16, #tpu.memory_space<vmem>>, vector<16x16xbf16>
    %43 = arith.truncf %41 : vector<16x128xf32> to vector<16x128xbf16>
    %cst_37 = arith.constant dense<0.000000e+00> : vector<16x128xf32>
    %44 = tpu.matmul %42, %43, %cst_37 {dimension_numbers = #tpu.dot_dimension_numbers<[1], [0], [0], [1], [0, 0, 1, 1], [], []>} : vector<16x16xbf16>, vector<16x128xbf16>, vector<16x128xf32> -> vector<16x128xf32>
    %45 = tpu.reciprocal %44 {approx = true} : vector<16x128xf32> -> vector<16x128xf32>
    %46 = arith.mulf %41, %45 : vector<16x128xf32>
    %47 = arith.truncf %46 : vector<16x128xf32> to vector<16x128xbf16>
    %c0_38 = arith.constant 0 : index
    %c0_39 = arith.constant 0 : index
    %48 = vector.load %arg8[%c0_38, %c0_39] : memref<16x128xbf16, #tpu.memory_space<vmem>>, vector<16x128xbf16>
    tpu.vector_store %arg8[%c0_38, %c0_39], %47 {strides = array<i32>} : memref<16x128xbf16, #tpu.memory_space<vmem>>, vector<16x128xbf16>,
    return
  }
  func.func @transform_0(%arg0: i32) -> (i32, i32) {
    %c0_i32 = arith.constant 0 : i32
    %c0_i32_0 = arith.constant 0 : i32
    return %c0_i32, %arg0 : i32, i32
  }
  func.func @transform_1(%arg0: i32) -> (i32, i32) {
    %c1_i32 = arith.constant 1 : i32
    %0 = arith.addi %arg0, %c1_i32 : i32
    %c1_i32_0 = arith.constant 1 : i32
    %1 = arith.muli %0, %c1_i32_0 : i32
    %c0_i32 = arith.constant 0 : i32
    %c0_i32_1 = arith.constant 0 : i32
    return %c0_i32, %1 : i32, i32
  }
  func.func @transform_2(%arg0: i32) -> (i32, i32, i32) {
    %c0_i32 = arith.constant 0 : i32
    %c0_i32_0 = arith.constant 0 : i32
    %c0_i32_1 = arith.constant 0 : i32
    %c0_i32_2 = arith.constant 0 : i32
    return %c0_i32, %c0_i32_0, %c0_i32_1 : i32, i32, i32
  }
  func.func @transform_3(%arg0: i32) -> (i32, i32) {
    %c0_i32 = arith.constant 0 : i32
    %c0_i32_0 = arith.constant 0 : i32
    %c0_i32_1 = arith.constant 0 : i32
    return %c0_i32, %c0_i32_0 : i32, i32
  }
  func.func @transform_4(%arg0: i32) -> (i32, i32) {
    %c0_i32 = arith.constant 0 : i32
    %c0_i32_0 = arith.constant 0 : i32
    %c0_i32_1 = arith.constant 0 : i32
    return %c0_i32, %c0_i32_0 : i32, i32
  }
  func.func @transform_5(%arg0: i32) -> (i32, i32) {
    %c0_i32 = arith.constant 0 : i32
    %c0_i32_0 = arith.constant 0 : i32
    %c0_i32_1 = arith.constant 0 : i32
    return %c0_i32, %c0_i32_0 : i32, i32
  }
  func.func @transform_6(%arg0: i32) -> (i32, i32) {
    %c0_i32 = arith.constant 0 : i32
    %c0_i32_0 = arith.constant 0 : i32
    return %c0_i32, %arg0 : i32, i32
  }
  func.func @transform_7(%arg0: i32) -> (i32, i32) {
    %c0_i32 = arith.constant 0 : i32
    %c0_i32_0 = arith.constant 0 : i32
    return %c0_i32, %arg0 : i32, i32
  }
}

</mosaic_0001>

<bundles_post_ra>
// kernel: mul.11
= control target key start
LH: loop header
LB: loop body
LE: loop exit
PB: predicated region body
PF: predicated region fallthrough
CT: control target
= control target key end

     0   :  { %vm8_vm0 = vcmask 31744   ;;  %s40_s8 = smov 4   ;;  %s41_s9 = smov 8   ;;  %vm14_vm1 = vcmask 130144   ;;  %vm20_vm2 = vcmask 97344   ;;  %vm26_vm3 = vcmask 64544   ;;  %s58_s0 = inlined_call_operand.vmem [shape: f32[4,4], index: 0, kind: input, shape index: {}]   ;;  %s59_s1 = inlined_call_operand.vmem [shape: f32[16], index: 1, kind: output, shape index: {}]  }
   0x1   :  { %v5_v0 = vld [vmem:[%s58_s0] sm:$0xf]  ;;  %s39_s0 = smov 12  }
   0x2   :  { %6 = vst [vmem:[#allocation1] sm:$0xf] %v5_v0 }
   0x9   :  { %v11_v1 = vld [vmem:[#allocation1 + $0x3] sm:$0x1]   ;;  %v23_v2 = vld [vmem:[#allocation1 + $0x1] sm:$0x1]   ;;  %v7_v3 = vld [vmem:[#allocation1] sm:$0x1]  }
   0xa   :  { %12 = vrot.lane.b32.xlu0 %v11_v1, %s39_s0  ;;  %24 = vrot.lane.b32.xlu1 %v23_v2, %s40_s8  ;;  %v17_v4 = vld [vmem:[#allocation1 + $0x2] sm:$0x1]   ;;  %9 = vst.msk [vmem:[#allocation0] sm:$0x1] %vm8_vm0, %v7_v3  }
   0xe   :  { %18 = vrot.lane.b32.xlu0 %v17_v4, %s41_s9 }
  0x7c   :  { %v13_v5 = vpop.permute.xlu0 %12   ;;  %v25_v6 = vpop.permute.xlu1 %24  }
  0x7d   :  { %15 = vst.msk [vmem:[#allocation0] sm:$0x1] %vm14_vm1, %v13_v5  }
  0x80   :  { %v19_v7 = vpop.permute.xlu0 %18  }
  0x81   :  { %21 = vst.msk [vmem:[#allocation0] sm:$0x1] %vm20_vm2, %v19_v7  }
  0x82   :  { %27 = vst.msk [vmem:[#allocation0] sm:$0x1] %vm26_vm3, %v25_v6  }
  0x89   :  { %v32_v8 = vld [vmem:[#allocation0] sm:$0x1] }
  0x8a   :  { %35 = vst [vmem:[%s59_s1] sm:$0x1] %v32_v8 }

// kernel: depthwise_m2o_index_block.1
= control target key start
LH: loop header
LB: loop body
LE: loop exit
PB: predicated region body
PF: predicated region fallthrough
CT: control target
= control target key end

     0   :  { %s1297_s24 = smov 0   ;;  %s1299_s25 = smov 0   ;;  %s1452_s0 = inlined_call_operand.vmem [shape: bf16[16,384], index: 0, kind: input, shape index: {}, may-alias: {0,1}]   ;;  %s1453_s1 = inlined_call_operand.vmem [shape: bf16[16,384], index: 1, kind: input, shape index: {}, may-alias: {0,1}]   ;;  %s1454_s2 = inlined_call_operand.vmem [shape: bf16[4,16,16], index: 2, kind: input, shape index: {}]   ;;  %s1455_s3 = inlined_call_operand.vmem [shape: f32[16,1], index: 3, kind: input, shape index: {}]   ;;  %s1456_s4 = inlined_call_operand.vmem [shape: bf16[16,16], index: 4, kind: input, shape index: {}]   ;;  %s1457_s5 = inlined_call_operand.vmem [shape: bf16[16,16], index: 5, kind: input, shape index: {}]   ;;  %s1458_s6 = inlined_call_operand.vmem [shape: bf16[16,256], index: 6, kind: output, shape index: {0}]   ;;  %s1459_s7 = inlined_call_operand.vmem [shape: bf16[16,256], index: 7, kind: output, shape index: {1}]  }
   0x1   :  { %s1301_s26 = smov 0   ;;  %s1303_s27 = smov 0  }
   0x2   :  { %s1305_s28 = smov 0  }
   0x3 LB: > { %s1323_s29 = sadd.s32 4294967295, %s1249_s28   ;;  %s1326_s30 = sadd.s32 1, %s1249_s28   ;;  %s1249_s28 = sphi %s1305_s28, %s1466_s28   ;;  %s1245_s27 = sphi %s1303_s27, %s1465_s27   ;;  %s1241_s26 = sphi %s1301_s26, %s1464_s26   ;;  %s1237_s25 = sphi %s1299_s25, %s1463_s25   ;;  %s1233_s24 = sphi %s1297_s24, %s1462_s24  }
   0x4   : > { %s22_s8 = ssub.s32 %s1249_s28, %s1326_s30  ;;  %s25_s9 = sadd.s32 1, %s1245_s27 }
   0x5   : > { %p23_p0 = scmp.eq.s32.totalorder %s22_s8, 0  ;;  %p32_p1 = scmp.ne.s32.totalorder %s1245_s27, %s1241_s26 }
   0x6   : > { %p33_p2 = scmp.eq.s32.totalorder %s1249_s28, 0  ;;  %s49_s10 = sadd.s32 1, %s1326_s30 }
   0x7   : > { %s1336_s11 = scalar_select %p23_p0, %s1245_s27, %s25_s9  }
   0x8   : > { %p34_p3 = por %p33_p2, %p32_p1  ;;  %s50_s12 = ssub.s32 %s1326_s30, %s49_s10 }
   0x9   : > { %p51_p4 = scmp.eq.s32.totalorder %s50_s12, 0  ;;  %s53_s13 = sadd.s32 1, %s1237_s25 }
   0xa   : > { %p60_p5 = scmp.ne.s32.totalorder %s1237_s25, %s1233_s24  ;;  %p174_p6 = scmp.eq.s32.totalorder %s1323_s29, 1 }
   0xb   : > { %s1344_s14 = scalar_select %p51_p4, %s1237_s25, %s53_s13  }
   0xc   : > { %p1346_p7 = por %p60_p5, %p33_p2  ;;  %p1350_p8 = por %p174_p6, %p32_p1 }
   0xd   : > { %p1032_p9 = scmp.ge.s32.totalorder %s1249_s28, 2 }
   0xf   : > { %234 = sbr.rel (%p1032_p9) target bundleno = 30 (0x1e), region = 32 }
  0x14   : > { %237 = sbr.rel (!%p34_p3) target bundleno = 25 (0x19), region = 36  ;;  %s239_s17 = sand.u32 (%p34_p3), 1, %s1245_s27  }
  0x15   : > { %s1034_s18 = sshll.u32 (%p34_p3), %s1249_s28, 2  ;;  %s1033_s19 = sshll.u32 (%p34_p3), %s239_s17, 3 }
  0x16   : > { %s243_s22 = scalar_lea.vmem (%p34_p3), %s1452_s0, %s1034_s18  ;;  %s241_s23 = scalar_lea.vmem (%p34_p3), [#allocation3], %s1033_s19 }
  0x17   : > { %v260_v0 = vld [vmem:[%s243_s22] sm:$0xf] (%p34_p3)  ;;  %v262_v1 = vld [vmem:[%s243_s22 + $0xc] sm:$0xf] (%p34_p3) }
  0x18   : > { %261 = vst [vmem:[%s241_s23] sm:$0xf] (%p34_p3), %v260_v0  ;;  %263 = vst [vmem:[%s241_s23 + $0x4] sm:$0xf] (%p34_p3), %v262_v1 }
  0x19 PF: > { %291 = sbr.rel (!%p1346_p7) target bundleno = 30 (0x1e), region = 77  ;;  %s293_s8 = sand.u32 (%p1346_p7), 1, %s1237_s25  }
  0x1a   : > { %s1036_s9 = sshll.u32 (%p1346_p7), %s1249_s28, 2  ;;  %s1035_s10 = sshll.u32 (%p1346_p7), %s293_s8, 3 }
  0x1b   : > { %s952_s17 = scalar_lea.vmem (%p1346_p7), %s1453_s1, %s1036_s9  ;;  %s295_s18 = scalar_lea.vmem (%p1346_p7), [#allocation4], %s1035_s10 }
  0x1c   : > { %v1037_v2 = vld [vmem:[%s952_s17 + $0x4] sm:$0xf] (%p1346_p7)  ;;  %v1038_v3 = vld [vmem:[%s952_s17 + $0x10] sm:$0xf] (%p1346_p7) }
  0x1d   : > { %316 = vst [vmem:[%s295_s18] sm:$0xf] (%p1346_p7), %v1037_v2  ;;  %318 = vst [vmem:[%s295_s18 + $0x4] sm:$0xf] (%p1346_p7), %v1038_v3 }
  0x1e PF: > { %p1039_p10 = scmp.ge.s32.totalorder %s1249_s28, 1  ;;  %p345_p11 = scmp.lt.s32.totalorder %s1249_s28, 3 }
  0x20   : > { %p346_p12 = pnand %p1039_p10, %p345_p11 }
  0x21   : > { %s352_s15 = sand.u32 (!%p346_p12), 1, %s1241_s26   ;;  %s359_s19 = sand.u32 (!%p346_p12), 1, %s1233_s24  }
  0x22   : > { %349 = sbr.rel (%p346_p12) target bundleno = 867 (0x363), region = 118  ;;  %s1371_s20 = sshll.u32 (!%p346_p12), %s352_s15, 3 }
  0x23   : > { %s1041_s21 = sshll.u32 (!%p346_p12), %s359_s19, 3  ;;  %s354_s28 = scalar_lea.vmem (!%p346_p12), [#allocation3], %s1371_s20 }
  0x24   : > { %s361_s24 = scalar_lea.vmem (!%p346_p12), [#allocation4], %s1041_s21  ;;  %s1253_s26 = smov (!%p346_p12), 119  }
  0x25   : > { %s1254_s22 = smov (!%p346_p12), 127   ;;  %s1256_s9 = smov (!%p346_p12), 118  }
  0x26   : > { %s390_s23 = scalar_lea.vmem (!%p346_p12), [#allocation5], %s1371_s20  ;;  %s396_s10 = scalar_lea.vmem (!%p346_p12), [#allocation6], %s1371_s20 }
  0x27   : > { %v1251_v4 = vmov 0.0   ;;  %vm1252_vm0 = vmmov 0   ;;  %v399_v5 = vld [vmem:[%s354_s28] sm:$0xf]  ;;  %v400_v6 = vld [vmem:[%s354_s28 + $0x4] sm:$0xf] }
  0x28   : > { %1107 = vmatprep.subr.bf16.mxu1 %v1251_v4  ;;  %1109 = vmatprep.mubr.msk.bf16.mxu1 %vm1252_vm0, %v1251_v4  ;;  %v403_v7 = vld [vmem:[%s361_s24] sm:$0xf]  ;;  %401 = vst [vmem:[#allocation2] sm:$0xf] %v399_v5  ;;  %402 = vst [vmem:[#allocation2 + $0x8] sm:$0xf] %v400_v6 }
  0x29   : > { %1101 = vmatprep.subr.bf16.mxu0 %v1251_v4  ;;  %1103 = vmatprep.mubr.msk.bf16.mxu0 %vm1252_vm0, %v1251_v4  ;;  %v404_v8 = vld [vmem:[%s361_s24 + $0x4] sm:$0xf]  ;;  %405 = vst [vmem:[#allocation2 + $0x4] sm:$0xf] %v403_v7  ;;  %vm436_vm1 = vcmask 130048   ;;  %v1255_v13 = vmov 0  }
  0x2a   : > { %406 = vst [vmem:[#allocation2 + $0xc] sm:$0xf] %v404_v8  ;;  %v1189_v12 = vld [vmem:[%s1454_s2] sm:$0xff]   ;;  %1183 = vset.pattern.permute.xlu0 %v1255_v13  ;;  %1184 = vset.pattern.permute.xlu1 %v1255_v13  ;;  %v659_v15 = vld [vmem:[%s1455_s3 + $0x8] sm:$0xff]  ;;  %vm433_vm2 = vcmask 1039360   ;;  %vm548_vm3 = vcmask 973824  }
  0x2b   : > { %v658_v14 = vld [vmem:[%s1455_s3] sm:$0xff]  ;;  %v1190_v21 = vld [vmem:[%s1454_s2 + $0x8] sm:$0xff]   ;;  %vm609_vm4 = vcmask 965632   ;;  %v1191_v26 = vld [vmem:[%s1454_s2 + $0x18] sm:$0xff]   ;;  %s1071_s12 = sshll.u32 (%p1350_p8), %s1323_s29, 2 }
  0x2c   : > { %v1192_v27 = vld [vmem:[%s1454_s2 + $0x10] sm:$0xff]   ;;  %v1193_v59 = vld [vmem:[%s1456_s4] sm:$0xff]   ;;  %s830_s18 = scalar_lea.vmem (%p1350_p8), %s1458_s6, %s1071_s12 }
  0x2f   : > { %v1185_v9 = vld [vmem:[#allocation2] ss:$8 sps:$4 sm:$0xff]  }
  0x30   : > { %v1188_v10 = vld [vmem:[#allocation2] ss:$8 sps:$4 sm:$0xff]   ;;  %544 = vrot.lane.b32.xlu1 %v1185_v9, %s1253_s26  ;;  %429 = vrot.lane.b32.xlu0 %v1185_v9, %s1254_s22 }
  0x31   : > { %v1187_v11 = vld [vmem:[#allocation2 + $0x4] ss:$8 sps:$4 sm:$0xff]   ;;  %1108 = vmatpush3.bf16.msra.mxu1 %v1188_v10 }
  0x32   : > { %1119 = vmatprep.subr.bf16.mxu1 %v1251_v4 }
  0x34   : > { %546 = vrot.lane.b32.xlu1 %v1187_v11, %s1253_s26  ;;  %431 = vrot.lane.b32.xlu0 %v1187_v11, %s1254_s22 }
  0x35   : > { %1110 = vmatmul.mubr.msk.bf16.vlgmr.msra.gmra.mxu1 %vm436_vm1, %v1189_v12 }
  0x36   : > { %1121 = vmatprep.mubr.msk.bf16.mxu1 %vm1252_vm0, %v1251_v4 }
  0x38   : > { %607 = vrot.lane.b32.xlu1 %v1187_v11, %s1256_s9  ;;  %605 = vrot.lane.b32.xlu0 %v1185_v9, %s1256_s9 }
  0x3c   : > { %662 = vperm.xlu0 %1183, %v658_v14   ;;  %667 = vperm.xlu1 %1184, %v659_v15  }
  0xa2   : > { %v545_v16 = vpop.permute.xlu1 %544  ;;  %v430_v17 = vpop.permute.xlu0 %429 }
  0xa6   : > { %v547_v18 = vpop.permute.xlu1 %546  ;;  %v432_v19 = vpop.permute.xlu0 %431 }
  0xa7   : > { %v434_v20 = vsel %vm433_vm2, %v430_v17, %v432_v19  ;;  %v549_v24 = vsel %vm548_vm3, %v545_v16, %v547_v18  ;;  %v1194_v16 = vld [vmem:[%s1457_s5] sm:$0xff]  }
  0xa8   : > { %1102 = vmatpush3.bf16.msra.mxu0 %v434_v20 }
  0xa9   : > { %1113 = vmatprep.subr.bf16.mxu0 %v1251_v4 }
  0xaa   : > { %v608_v22 = vpop.permute.xlu1 %607  ;;  %v606_v23 = vpop.permute.xlu0 %605 }
  0xab   : > { %v610_v25 = vsel %vm609_vm4, %v606_v23, %v608_v22  ;;  %1104 = vmatmul.mubr.msk.bf16.vlgmr.msra.gmra.mxu0 %vm436_vm1, %v1190_v21 }
  0xac   : > { %1114 = vmatpush3.bf16.msra.mxu0 %v549_v24  ;;  %1120 = vmatpush3.bf16.msra.mxu1 %v610_v25 }
  0xad   : > { %1115 = vmatprep.mubr.msk.bf16.mxu0 %vm1252_vm0, %v1251_v4  ;;  %1125 = vmatprep.subr.bf16.mxu0 %v1251_v4 }
  0xae   : > { %1131 = vmatprep.subr.bf16.mxu1 %v1251_v4 }
  0xaf   : > { %1122 = vmatmul.mubr.msk.bf16.vlgmr.msra.gmra.mxu1 %vm436_vm1, %v1191_v26 }
  0xb0   : > { %1133 = vmatprep.mubr.msk.bf16.mxu1 %vm1252_vm0, %v1251_v4 }
  0xb3   : > { %1116 = vmatmul.mubr.msk.bf16.vlgmr.msra.gmra.mxu0 %vm436_vm1, %v1192_v27 }
  0xb4   : > { %1127 = vmatprep.mubr.msk.bf16.mxu0 %vm1252_vm0, %v1251_v4 }
  0xb7   : > { %v663_v42 = vpop.permute.xlu0 %662  ;;  %v668_v51 = vpop.permute.xlu1 %667 }
  0xf5   : > { %v529_v28 = vpop.f32.mrf.mxu1 }
  0xf7   : > { %v1111_v29 = vpop.f32.mrf.mxu1 }
  0xf9   : > { %v532_v30 = vpop.f32.mrf.mxu1 }
  0xfb   : > { %v1112_v31 = vpop.f32.mrf.mxu1 }
 0x16b   : > { %v474_v32 = vpop.f32.mrf.mxu0 }
 0x16c   : > { %v530_v38 = vadd.f32 %v529_v28, %v474_v32 }
 0x16d   : > { %v1105_v33 = vpop.f32.mrf.mxu0 }
 0x16f   : > { %v477_v34 = vpop.f32.mrf.mxu0  ;;  %v649_v35 = vpop.f32.mrf.mxu1 }
 0x170   : > { %v533_v45 = vadd.f32 %v532_v30, %v477_v34 }
 0x171   : > { %v1106_v36 = vpop.f32.mrf.mxu0  ;;  %v1123_v37 = vpop.f32.mrf.mxu1 }
 0x173   : > { %v588_v39 = vpop.f32.mrf.mxu0  ;;  %v652_v40 = vpop.f32.mrf.mxu1 }
 0x174   : > { %v595_v41 = vadd.f32 %v588_v39, %v530_v38 }
 0x175   : > { %v1117_v43 = vpop.f32.mrf.mxu0  ;;  %v1124_v44 = vpop.f32.mrf.mxu1 }
 0x176   : > { %v656_v46 = vadd.f32 %v649_v35, %v595_v41 }
 0x177   : > { %v591_v47 = vpop.f32.mrf.mxu0 }
 0x178   : > { %v596_v48 = vadd.f32 %v591_v47, %v533_v45  ;;  %v670_v49 = vadd.f32 %v663_v42, %v656_v46 }
 0x179   : > { %v1118_v50 = vpop.f32.mrf.mxu0 }
 0x17a   : > { %v657_v52 = vadd.f32 %v652_v40, %v596_v48  ;;  %v672_v53 = vmax.f32 %v670_v49, 0.0 }
 0x17c   : > { %v671_v54 = vadd.f32 %v668_v51, %v657_v52  ;;  %v674_v56 = vmin.f32 %v672_v53, 6.0 }
 0x17e   : > { %v673_v55 = vmax.f32 %v671_v54, 0.0 }
 0x180   : > { %v675_v57 = vmin.f32 %v673_v55, 6.0 }
 0x182   : > { %v678_v58 = vpack.c.bf16 %v675_v57, %v674_v56 }
 0x184   : > { %1126 = vmatpush3.bf16.msra.mxu0 %v678_v58 }
 0x187   : > { %1128 = vmatmul.mubr.msk.bf16.vlgmr.msra.gmra.mxu0 %vm436_vm1, %v1193_v59 }
 0x247   : > { %v721_v60 = vpop.f32.mrf.mxu0 }
 0x248   : > { %v728_v61 = vsub.f32 0.0, %v721_v60 }
 0x249   : > { %v1129_v62 = vpop.f32.mrf.mxu0 }
 0x24a   : > { %v730_v63 = vmul.f32 1.442695, %v728_v61 }
 0x24b   : > { %v724_v0 = vpop.f32.mrf.mxu0 }
 0x24c   : > { %1195 = vpow2.f32 %v730_v63  ;;  %v729_v1 = vsub.f32 0.0, %v724_v0 }
 0x24d   : > { %v1130_v2 = vpop.f32.mrf.mxu0 }
 0x24e   : > { %v732_v3 = vmul.f32 1.442695, %v729_v1 }
 0x250   : > { %1197 = vpow2.f32 %v732_v3 }
 0x259   : > { %v1196_v4 = vpop.eup %1195 }
 0x25a   : > { %v734_v5 = vadd.f32 1.0, %v1196_v4 }
 0x25c   : > { %1199 = vrcp.f32 %v734_v5 }
 0x25d   : > { %v1198_v6 = vpop.eup %1197 }
 0x25e   : > { %v735_v7 = vadd.f32 1.0, %v1198_v6 }
 0x260   : > { %1201 = vrcp.f32 %v735_v7 }
 0x269   : > { %v1200_v8 = vpop.eup %1199 }
 0x26a   : > { %v748_v9 = vmul.f32 1.442695, %v1200_v8 }
 0x26c   : > { %1203 = vpow2.f32 %v748_v9 }
 0x26d   : > { %v1202_v10 = vpop.eup %1201 }
 0x26e   : > { %v1082_v11 = vpack.c.bf16 %v1202_v10, %v1200_v8  ;;  %v750_v12 = vmul.f32 1.442695, %v1202_v10 }
 0x270   : > { %1083 = vst [vmem:[%s390_s23] sm:$0xff] %v1082_v11   ;;  %1205 = vpow2.f32 %v750_v12 }
 0x277   : > { %v847_v26 = vld [vmem:[%s390_s23] sm:$0xf] (%p1350_p8)  ;;  %v849_v27 = vld [vmem:[%s390_s23 + $0x4] sm:$0xf] (%p1350_p8) }
 0x278   : > { %848 = vst [vmem:[%s830_s18] sm:$0xf] (%p1350_p8), %v847_v26  ;;  %850 = vst [vmem:[%s830_s18 + $0x8] sm:$0xf] (%p1350_p8), %v849_v27 }
 0x279   : > { %v1204_v13 = vpop.eup %1203 }
 0x27d   : > { %v1206_v14 = vpop.eup %1205 }
 0x27e   : > { %v754_v15 = vpack.c.bf16 %v1206_v14, %v1204_v13 }
 0x280   : > { %1132 = vmatpush3.bf16.msra.mxu1 %v754_v15 }
 0x283   : > { %1134 = vmatmul.mubr.msk.bf16.vlgmr.msra.gmra.mxu1 %vm436_vm1, %v1194_v16 }
 0x343   : > { %v797_v17 = vpop.f32.mrf.mxu1 }
 0x344   : > { %1207 = vrcp.f32 %v797_v17 }
 0x345   : > { %v1135_v18 = vpop.f32.mrf.mxu1 }
 0x347   : > { %v800_v19 = vpop.f32.mrf.mxu1 }
 0x348   : > { %1209 = vrcp.f32 %v800_v19 }
 0x349   : > { %v1136_v20 = vpop.f32.mrf.mxu1 }
 0x351   : > { %v1208_v21 = vpop.eup %1207 }
 0x352   : > { %v806_v23 = vmul.f32 %v1208_v21, %v1204_v13 }
 0x355   : > { %v1210_v22 = vpop.eup %1209 }
 0x356   : > { %v807_v24 = vmul.f32 %v1210_v22, %v1206_v14  ;;  %828 = sbr.rel (!%p1350_p8) target bundleno = 859 (0x35b), region = 130 }
 0x358   : > { %v1087_v25 = vpack.c.bf16 %v807_v24, %v806_v23 }
 0x35a   : > { %1088 = vst [vmem:[%s396_s10] sm:$0xff] %v1087_v25  }
 0x35b PF: > { %878 = sbr.rel (!%p1350_p8) target bundleno = 867 (0x363), region = 171  ;;  %s1072_s20 = sshll.u32 (%p1350_p8), %s1323_s29, 2 }
 0x35c   : > { %s880_s21 = scalar_lea.vmem (%p1350_p8), %s1459_s7, %s1072_s20 }
 0x361   : > { %v897_v28 = vld [vmem:[%s396_s10] sm:$0xf]  ;;  %v899_v29 = vld [vmem:[%s396_s10 + $0x4] sm:$0xf] }
 0x362   : > { %898 = vst [vmem:[%s880_s21] sm:$0xf] %v897_v28  ;;  %900 = vst [vmem:[%s880_s21 + $0x8] sm:$0xf] %v899_v29 }
 0x363 PF: > { %p15_p13 = scmp.ge.s32.totalorder %s1326_s30, 4   ;;  %s1462_s24 = smov %s1237_s25 }
 0x364   : > { %s1463_s25 = smov %s1344_s14  ;;  %s1464_s26 = smov %s1245_s27 }
 0x365   : > { %s1465_s27 = smov %s1336_s11  ;;  %s1466_s28 = smov %s1326_s30 }
 0x366   :  { %17 = sbr.rel (!%p15_p13) target bundleno = 3 (0x3), region = 266 }

</bundles_post_ra>
